<compile_context>
chip_gen: v5e
topology: v5e:2x2
jax: 0.10.0
libtpu: 0.0.40
codegen_flags: <defaults>
</compile_context>

<pallas_src>
import jax
import jax.numpy as jnp
from jax.experimental import pallas as pl
from jax.experimental.pallas import tpu as pltpu


def _ffn_kernel(x_ref, w1_ref, b1_ref, w2_ref, b2_ref, o_ref, acc_ref):
    # x_ref:  (tm, Dp)    w1_ref: (Dp, th)   b1_ref: (1, th)
    # w2_ref: (th, tn)    b2_ref: (1, tn)    o_ref:  (tm, tn)
    # acc_ref:(tm, tn) f32 scratch, resident across the H (reduction) axis.
    k = pl.program_id(2)

    @pl.when(k == 0)
    def _init():
        acc_ref[...] = jnp.zeros_like(acc_ref)

    # First layer on this H slice: x @ W1[:, slice] + b1[slice], ReLU.
    # (Recomputed per O tile; O tiling only kicks in for very wide outputs.)
    h = jnp.dot(x_ref[...], w1_ref[...], preferred_element_type=jnp.float32)
    h = jnp.maximum(h + b1_ref[...], 0.0)

    # Second layer partial product for this (H slice, O slice), f32 accumulate.
    # NOTE: with bf16 compute the post-ReLU activation is downcast here — a
    # deliberate precision/throughput tradeoff; accumulation stays f32.
    acc_ref[...] += jnp.dot(h.astype(w2_ref.dtype), w2_ref[...],
                            preferred_element_type=jnp.float32)

    @pl.when(k == pl.num_programs(2) - 1)
    def _finalize():
        o_ref[...] = (acc_ref[...] + b2_ref[...]).astype(o_ref.dtype)


def _round_up(x, m):
    return ((x + m - 1) // m) * m


def _div_tiles(total, unit=128):
    """All multiples of `unit` that divide `total`, descending."""
    return [t for t in range(total, unit - 1, -unit) if total % t == 0]


def _largest_div_tile(total, want, unit=128):
    for t in _div_tiles(total, unit):
        if t <= max(want, unit):
            return t
    return unit


def _vmem_bytes(tm, th, tn, D_p, isz, osz):
    """VMEM footprint: double-buffered BlockSpec operands + f32 accumulator."""
    dbuf = 2 * (tm * D_p * isz       # x tile
                + D_p * th * isz     # W1 tile
                + 8 * th * 4         # b1 tile (sublane-padded, f32)
                + th * tn * isz      # W2 tile
                + 8 * tn * 4         # b2 tile (sublane-padded, f32)
                + tm * tn * osz)     # out tile
    return dbuf + tm * tn * 4        # accumulator scratch


def _vmem_budget():
    """(physical_capacity, usable_budget) in bytes for the current chip."""
    try:
        cap = int(pltpu.get_tpu_info().vmem_capacity_bytes)
    except Exception:
        cap = 64 << 20  # conservative (v7x-sized) if the query is unavailable
    # Leave pipeline/compiler headroom: ~54 MiB on v7x (64 MiB physical),
    # ~108 MiB on v5e/v6e (128 MiB physical).
    budget = min(cap - (8 << 20), int(cap * 0.85))
    return cap, max(budget, 8 << 20)


def _select_tiles(M, D_p, H_p, O_p, isz, osz, budget, row_align,
                  tile_m, tile_n):
    tn = _largest_div_tile(O_p, tile_n)
    h_floor = min(H_p, 256)  # 256-deep MXU on v6e/v7x; harmless on v5e.

    # Row-tile candidates (big first), multiple of the packing alignment,
    # capped so the "parallel" M axis has >= 2 tiles (v7x dual TensorCore).
    tm_hi = max(row_align, _round_up(min(tile_m, M), row_align))
    if M >= 2 * row_align:
        tm_hi = min(tm_hi, max(row_align, _round_up(pl.cdiv(M, 2), row_align)))
    tm_cands, t = [], tm_hi
    while True:
        tm_cands.append(t)
        nxt = max(row_align, _round_up(t // 2, row_align))
        if nxt >= t:
            break
        t = nxt

    # 1) Prefer th = H_p: weight block indices are then constant over the whole
    #    grid, so W1/W2 are DMA'd from HBM exactly once.
    for tm in tm_cands:
        if _vmem_bytes(tm, H_p, tn, D_p, isz, osz) <= budget:
            return tm, H_p, tn

    # 2) H must be tiled: weights are re-streamed once per M tile, so keep tm
    #    as large as possible; prefer th >= h_floor (full-depth MXU passes).
    h_tiles = _div_tiles(H_p)
    for min_th in (h_floor, 128):
        for tm in tm_cands:
            for th in h_tiles:
                if th < min_th:
                    break
                if _vmem_bytes(tm, th, tn, D_p, isz, osz) <= budget:
                    return tm, th, tn

    # 3) Last resort: smallest tiles (VMEM request will cover the estimate).
    return tm_cands[-1], h_tiles[-1], _div_tiles(O_p)[-1]


class PositionWiseFFN:
    """Fused position-wise FFN; weights padded/cast ONCE at construction."""

    def __init__(self, w1, b1, w2, b2, *, compute_dtype=None, out_dtype=None,
                 tile_m=512, tile_n=512, tile_h=None):
        self.d_model, self.hidden = w1.shape
        self.out_features = w2.shape[1]
        self.cdt = jnp.dtype(compute_dtype) if compute_dtype is not None \
            else jnp.dtype(w1.dtype)
        self.odt = jnp.dtype(out_dtype) if out_dtype is not None \
            else jnp.dtype(w1.dtype)
        self.tile_m = tile_m
        self.tile_n = tile_n
        self.tile_h = tile_h  # optional override (testing / manual tuning)

        D, H, O = self.d_model, self.hidden, self.out_features
        self.D_p = _round_up(D, 128)
        self.H_p = _round_up(H, 128)
        self.O_p = _round_up(O, 128)

        # Pad/cast once (hoisted out of the per-call path).  Zero padding is
        # exact: padded D/H columns contribute 0 through both matmuls; padded
        # rows / O columns are sliced off after the kernel.
        cdt = self.cdt
        self.w1p = jnp.zeros((self.D_p, self.H_p), cdt).at[:D, :H].set(
            w1.astype(cdt))
        self.b1p = jnp.zeros((1, self.H_p), jnp.float32).at[0, :H].set(
            b1.astype(jnp.float32))
        self.w2p = jnp.zeros((self.H_p, self.O_p), cdt).at[:H, :O].set(
            w2.astype(cdt))
        self.b2p = jnp.zeros((1, self.O_p), jnp.float32).at[0, :O].set(
            b2.astype(jnp.float32))

    def __call__(self, x):
        B, S, D = x.shape
        assert D == self.d_model, (D, self.d_model)
        M = B * S
        O = self.out_features

        isz = jnp.dtype(self.cdt).itemsize
        osz = jnp.dtype(self.odt).itemsize
        # Sub-32-bit dtypes pack rows along sublanes: f32->8, bf16->16, 8b->32.
        row_align = max(8, 32 // max(isz, 1))

        capacity, budget = _vmem_budget()
        tm, th, tn = _select_tiles(M, self.D_p, self.H_p, self.O_p,
                                   isz, osz, budget, row_align,
                                   self.tile_m, self.tile_n)
        if self.tile_h is not None:
            th = _largest_div_tile(self.H_p, self.tile_h)
        M_p = _round_up(M, tm)

        # Activation fast path: no padded HBM copy when already lane-aligned.
        x2 = x.reshape(M, D)
        if x2.dtype != self.cdt:
            x2 = x2.astype(self.cdt)
        if D != self.D_p or M != M_p:
            x2 = jnp.zeros((M_p, self.D_p), self.cdt).at[:M, :D].set(x2)

        est = _vmem_bytes(tm, th, tn, self.D_p, isz, osz)
        vmem_limit = int(min(max(est + (4 << 20), 8 << 20), capacity))

        grid = (M_p // tm, self.O_p // tn, self.H_p // th)

        # TODO(synk): if profiling shows exposed DMA at H-step boundaries with
        # small th, sweep pipeline_mode=pl.Buffered(3) on the W1/W2 specs.
        out2 = pl.pallas_call(
            _ffn_kernel,
            out_shape=jax.ShapeDtypeStruct((M_p, self.O_p), self.odt),
            grid_spec=pltpu.PrefetchScalarGridSpec(
                num_scalar_prefetch=0,
                grid=grid,
                in_specs=[
                    pl.BlockSpec((tm, self.D_p), lambda i, n, k: (i, 0)),  # x
                    pl.BlockSpec((self.D_p, th), lambda i, n, k: (0, k)),  # W1
                    pl.BlockSpec((1, th),        lambda i, n, k: (0, k)),  # b1
                    pl.BlockSpec((th, tn),       lambda i, n, k: (k, n)),  # W2
                    pl.BlockSpec((1, tn),        lambda i, n, k: (0, n)),  # b2
                ],
                out_specs=pl.BlockSpec((tm, tn), lambda i, n, k: (i, n)),
                scratch_shapes=[pltpu.VMEM((tm, tn), jnp.float32)],
            ),
            compiler_params=pltpu.CompilerParams(
                dimension_semantics=("parallel", "parallel", "arbitrary"),
                vmem_limit_bytes=vmem_limit,
            ),
        )(x2, self.w1p, self.b1p, self.w2p, self.b2p)

        if M_p != M or self.O_p != O:
            out2 = out2[:M, :O]
        return out2.reshape(B, S, O)


def _ref_ffn(x, w1, b1, w2, b2):
    h = jnp.maximum(x @ w1 + b1, 0.0)
    return h @ w2 + b2


if __name__ == "__main__":
    # Shapes consistent with the module spec: X = torch.ones((2, 100, 24)).
    batch, seq, d_model = 2, 100, 24
    ffn_num_hiddens, ffn_num_outputs = 200, 24

    key = jax.random.PRNGKey(0)
    kx, k1, kb1, k2, kb2 = jax.random.split(key, 5)

    x = jax.random.normal(kx, (batch, seq, d_model), dtype=jnp.float32)
    # torch dense1.weight: (H, D) -> stored transposed as (D, H); bias (H,)
    w1 = jax.random.normal(k1, (d_model, ffn_num_hiddens), jnp.float32) * 0.1
    b1 = jax.random.normal(kb1, (ffn_num_hiddens,), jnp.float32) * 0.1
    # torch dense2.weight: (O, H) -> stored transposed as (H, O); bias (O,)
    w2 = jax.random.normal(k2, (ffn_num_hiddens, ffn_num_outputs), jnp.float32) * 0.1
    b2 = jax.random.normal(kb2, (ffn_num_outputs,), jnp.float32) * 0.1

    ref = _ref_ffn(x, w1, b1, w2, b2)

    # 1) Auto tiling: th = H_p (single H step, weights fetched once), >=2 M tiles.
    ffn = PositionWiseFFN(w1, b1, w2, b2)
    out = jax.block_until_ready(ffn(x))
    assert out.shape == (batch, seq, ffn_num_outputs)
    assert jnp.allclose(out, ref, atol=1e-2, rtol=1e-2), \
        float(jnp.max(jnp.abs(out - ref)))

    # 2) Forced multi-step H reduction + ragged-M padding path
    #    (M=200 with tm=64 -> M_p=256; H_p=256 with th=128 -> 2 accumulation steps).
    ffn_tiled = PositionWiseFFN(w1, b1, w2, b2, tile_m=64, tile_h=128)
    out2 = jax.block_until_ready(ffn_tiled(x))
    assert jnp.allclose(out2, ref, atol=1e-2, rtol=1e-2), \
        float(jnp.max(jnp.abs(out2 - ref)))

    # 3) bf16 matmul inputs (MXU fast path on all generations), f32 accumulation.
    ffn_bf16 = PositionWiseFFN(w1, b1, w2, b2, compute_dtype=jnp.bfloat16,
                               out_dtype=jnp.float32)
    out3 = jax.block_until_ready(ffn_bf16(x))
    assert jnp.allclose(out3, ref, atol=5e-2, rtol=5e-2), \
        float(jnp.max(jnp.abs(out3 - ref)))

    print("KERNEL_OK")
</pallas_src>

<mosaic_0001>
module attributes {stable_mosaic.version = 11 : i64} {
  func.func @_ffn_kernel(%arg0: i32, %arg1: i32, %arg2: i32, %arg3: memref<104x128xf32, #tpu.memory_space<vmem>>, %arg4: memref<128x256xf32, #tpu.memory_space<vmem>>, %arg5: memref<1x256xf32, #tpu.memory_space<vmem>>, %arg6: memref<256x128xf32, #tpu.memory_space<vmem>>, %arg7: memref<1x128xf32, #tpu.memory_space<vmem>>, %arg8: memref<104x128xf32, #tpu.memory_space<vmem>>, %arg9: memref<104x128xf32, #tpu.memory_space<vmem>>) attributes {dimension_semantics = [#tpu.dimension_semantics<parallel>, #tpu.dimension_semantics<parallel>, #tpu.dimension_semantics<arbitrary>], iteration_bounds = array<i64: 2, 1, 1>, scalar_prefetch = 0 : i64, scratch_operands = 1 : i64, tpu.core_type = #tpu.core_type<tc>, window_params = [{transform_indices = @transform_0, window_bounds = array<i64: 104, 128>}, {transform_indices = @transform_1, window_bounds = array<i64: 128, 256>}, {transform_indices = @transform_2, window_bounds = array<i64: 1, 256>}, {transform_indices = @transform_3, window_bounds = array<i64: 256, 128>}, {transform_indices = @transform_4, window_bounds = array<i64: 1, 128>}, {transform_indices = @transform_5, window_bounds = array<i64: 104, 128>}]} {
    %c0_i32 = arith.constant 0 : i32
    %0 = arith.cmpi eq, %arg2, %c0_i32 : i32
    %1 = arith.extui %0 : i1 to i32
    %c0_i32_0 = arith.constant 0 : i32
    %2 = arith.cmpi ne, %1, %c0_i32_0 : i32
    scf.if %2 {
      %cst_16 = arith.constant 0.000000e+00 : f32
      %19 = vector.broadcast %cst_16 : f32 to vector<104x128xf32>
      %c0_17 = arith.constant 0 : index
      %c0_18 = arith.constant 0 : index
      %20 = vector.load %arg9[%c0_17, %c0_18] : memref<104x128xf32, #tpu.memory_space<vmem>>, vector<104x128xf32>
      tpu.vector_store %arg9[%c0_17, %c0_18], %19 {strides = array<i32>} : memref<104x128xf32, #tpu.memory_space<vmem>>, vector<104x128xf32>,
    } else {
    }
    %c0 = arith.constant 0 : index
    %c0_1 = arith.constant 0 : index
    %3 = vector.load %arg3[%c0, %c0_1] : memref<104x128xf32, #tpu.memory_space<vmem>>, vector<104x128xf32>
    %c0_2 = arith.constant 0 : index
    %c0_3 = arith.constant 0 : index
    %4 = vector.load %arg4[%c0_2, %c0_3] : memref<128x256xf32, #tpu.memory_space<vmem>>, vector<128x256xf32>
    %cst = arith.constant dense<0.000000e+00> : vector<104x256xf32>
    %5 = tpu.matmul %3, %4, %cst {dimension_numbers = #tpu.dot_dimension_numbers<[1], [0], [0], [1], [0, 0, 1, 1], [], []>} : vector<104x128xf32>, vector<128x256xf32>, vector<104x256xf32> -> vector<104x256xf32>
    %c0_4 = arith.constant 0 : index
    %c0_5 = arith.constant 0 : index
    %6 = vector.load %arg5[%c0_4, %c0_5] : memref<1x256xf32, #tpu.memory_space<vmem>>, vector<1x256xf32>
    %7 = vector.broadcast %6 : vector<1x256xf32> to vector<104x256xf32>
    %8 = arith.addf %5, %7 : vector<104x256xf32>
    %cst_6 = arith.constant 0.000000e+00 : f32
    %9 = vector.broadcast %cst_6 : f32 to vector<104x256xf32>
    %10 = arith.maximumf %8, %9 : vector<104x256xf32>
    %c0_7 = arith.constant 0 : index
    %c0_8 = arith.constant 0 : index
    %11 = vector.load %arg9[%c0_7, %c0_8] : memref<104x128xf32, #tpu.memory_space<vmem>>, vector<104x128xf32>
    %c0_9 = arith.constant 0 : index
    %c0_10 = arith.constant 0 : index
    %12 = vector.load %arg6[%c0_9, %c0_10] : memref<256x128xf32, #tpu.memory_space<vmem>>, vector<256x128xf32>
    %cst_11 = arith.constant dense<0.000000e+00> : vector<104x128xf32>
    %13 = tpu.matmul %10, %12, %cst_11 {dimension_numbers = #tpu.dot_dimension_numbers<[1], [0], [0], [1], [0, 0, 1, 1], [], []>} : vector<104x256xf32>, vector<256x128xf32>, vector<104x128xf32> -> vector<104x128xf32>
    %14 = arith.addf %11, %13 : vector<104x128xf32>
    %c0_12 = arith.constant 0 : index
    %c0_13 = arith.constant 0 : index
    %15 = vector.load %arg9[%c0_12, %c0_13] : memref<104x128xf32, #tpu.memory_space<vmem>>, vector<104x128xf32>
    tpu.vector_store %arg9[%c0_12, %c0_13], %14 {strides = array<i32>} : memref<104x128xf32, #tpu.memory_space<vmem>>, vector<104x128xf32>,
    %c0_i32_14 = arith.constant 0 : i32
    %16 = arith.cmpi eq, %arg2, %c0_i32_14 : i32
    %17 = arith.extui %16 : i1 to i32
    %c0_i32_15 = arith.constant 0 : i32
    %18 = arith.cmpi ne, %17, %c0_i32_15 : i32
    scf.if %18 {
      %c0_16 = arith.constant 0 : index
      %c0_17 = arith.constant 0 : index
      %19 = vector.load %arg9[%c0_16, %c0_17] : memref<104x128xf32, #tpu.memory_space<vmem>>, vector<104x128xf32>
      %c0_18 = arith.constant 0 : index
      %c0_19 = arith.constant 0 : index
      %20 = vector.load %arg7[%c0_18, %c0_19] : memref<1x128xf32, #tpu.memory_space<vmem>>, vector<1x128xf32>
      %21 = vector.broadcast %20 : vector<1x128xf32> to vector<104x128xf32>
      %22 = arith.addf %19, %21 : vector<104x128xf32>
      %c0_20 = arith.constant 0 : index
      %c0_21 = arith.constant 0 : index
      %23 = vector.load %arg8[%c0_20, %c0_21] : memref<104x128xf32, #tpu.memory_space<vmem>>, vector<104x128xf32>
      tpu.vector_store %arg8[%c0_20, %c0_21], %22 {strides = array<i32>} : memref<104x128xf32, #tpu.memory_space<vmem>>, vector<104x128xf32>,
    } else {
    }
    return
  }
  func.func @transform_0(%arg0: i32, %arg1: i32, %arg2: i32) -> (i32, i32) {
    %c0_i32 = arith.constant 0 : i32
    %c0_i32_0 = arith.constant 0 : i32
    return %arg0, %c0_i32 : i32, i32
  }
  func.func @transform_1(%arg0: i32, %arg1: i32, %arg2: i32) -> (i32, i32) {
    %c0_i32 = arith.constant 0 : i32
    %c0_i32_0 = arith.constant 0 : i32
    return %c0_i32, %arg2 : i32, i32
  }
  func.func @transform_2(%arg0: i32, %arg1: i32, %arg2: i32) -> (i32, i32) {
    %c0_i32 = arith.constant 0 : i32
    %c0_i32_0 = arith.constant 0 : i32
    return %c0_i32, %arg2 : i32, i32
  }
  func.func @transform_3(%arg0: i32, %arg1: i32, %arg2: i32) -> (i32, i32) {
    %c0_i32 = arith.constant 0 : i32
    return %arg2, %arg1 : i32, i32
  }
  func.func @transform_4(%arg0: i32, %arg1: i32, %arg2: i32) -> (i32, i32) {
    %c0_i32 = arith.constant 0 : i32
    %c0_i32_0 = arith.constant 0 : i32
    return %c0_i32, %arg1 : i32, i32
  }
  func.func @transform_5(%arg0: i32, %arg1: i32, %arg2: i32) -> (i32, i32) {
    %c0_i32 = arith.constant 0 : i32
    return %arg0, %arg1 : i32, i32
  }
}

</mosaic_0001>

<bundles_post_ra>
// kernel: tpu_custom_call.1
= control target key start
LH: loop header
LB: loop body
LE: loop exit
PB: predicated region body
PF: predicated region fallthrough
CT: control target
= control target key end

     0   :  { %s1569_s0 = inlined_call_operand.hbm [shape: f32[208,128], index: 0, kind: input, shape index: {}]   ;;  %s1570_s1 = inlined_call_operand.hbm [shape: f32[128,256], index: 1, kind: input, shape index: {}]   ;;  %s1571_s2 = inlined_call_operand.hbm [shape: f32[1,256], index: 2, kind: input, shape index: {}]   ;;  %s1572_s3 = inlined_call_operand.hbm [shape: f32[256,128], index: 3, kind: input, shape index: {}]   ;;  %s1573_s4 = inlined_call_operand.vmem [shape: f32[1,128], index: 4, kind: input, shape index: {}]   ;;  %s1574_s5 = inlined_call_operand.hbm [shape: f32[208,128], index: 5, kind: output, shape index: {}]  }
   0x1   :  { %1577 = sst [smem:[#allocation16_spill]] %s1570_s1 }
   0x2   :  { %1578 = sst [smem:[#allocation17_spill]] %s1571_s2 }
   0x3   :  { %10 = vsyncpa [#allocation4], 0 }
   0x4   :  { %12 = vsyncpa [#allocation4 + $0x1], 0 }
   0x5   :  { %13 = vsyncpa [#allocation7], 0 }
   0x6   :  { %14 = vsyncpa [#allocation10], 0 }
   0x7   :  { %15 = vsyncpa [#allocation5], 0 }
   0x8   :  { %17 = vsyncpa [#allocation5 + $0x1], 0  ;;  %s1317_s18 = smov 0   ;;  %s1319_s19 = smov 0  }
   0x9   :  { %s1321_s20 = smov 0   ;;  %s1323_s21 = smov 0  }
   0xa   :  { %s1325_s22 = smov 0   ;;  %s1327_s23 = smov 0  }
   0xb LB: > { %s946_s24 = sadd.s32 4294967295, %s1276_s23   ;;  %s947_s25 = sadd.s32 4294967294, %s1276_s23   ;;  %s1276_s23 = sphi %s1327_s23, %s23_s23   ;;  %s1272_s22 = sphi %s1325_s22, %s1594_s22   ;;  %s1268_s21 = sphi %s1323_s21, %s1593_s21   ;;  %s1264_s20 = sphi %s1321_s20, %s1592_s20   ;;  %s1260_s19 = sphi %s1319_s19, %s1591_s19   ;;  %s1256_s18 = sphi %s1317_s18, %s1590_s18  }
   0xc   : > { %p62_p0 = scmp.ne.s32.totalorder %s1260_s19, %s1256_s18  ;;  %p1351_p1 = scmp.eq.s32.totalorder %s946_s24, 0 }
   0xd   : > { %p1355_p2 = scmp.eq.s32.totalorder %s946_s24, 1  ;;  %p200_p3 = scmp.eq.s32.totalorder %s947_s25, 1 }
   0xe   : > { %p1361_p4 = por %p1351_p1, %p62_p0  ;;  %p948_p5 = scmp.ge.s32.totalorder %s1276_s23, 1 }
   0xf   : > { %p1366_p6 = por %p200_p3, %p62_p0  ;;  %p207_p7 = scmp.lt.s32.totalorder %s1276_s23, 3 }
  0x10   : > { %s1583_s1 = sld [smem:[#allocation16_spill]]  ;;  %s1278_s9 = smov [#allocation6]  }
  0x11   : > { %p1374_p8 = pnand %p948_p5, %p207_p7  ;;  %s223_s10 = sshll.u32 %s1278_s9, 4  ;;  %s224_s10 = int_to_ptr.vmem [resolvable:$true] %s223_s10 }
  0x12   : > { %p953_p11 = scmp.ge.s32.totalorder %s1276_s23, 2  ;;  %s1586_s2 = sld [smem:[#allocation17_spill]] }
  0x13   : > { %p982_p9 = pneg %p1374_p8  ;;  %s1279_s15 = smov 256  }
  0x14   : > { %s1280_s16 = smov 16   ;;  %s1281_s17 = smov [#allocation8]  }
  0x15   : > { %p1382_p10 = pnand %p982_p9, %p1351_p1  ;;  %s240_s24 = sshll.u32 %s1281_s17, 4  ;;  %s241_s24 = int_to_ptr.vmem [resolvable:$true] %s240_s24 }
  0x16   : > { %s221_s7 = sshll.u32 %s1583_s1, 4  ;;  %s253_s6 = sshll.u32 %s1572_s3, 4  ;;  %s222_s7 = int_to_ptr.hbm [resolvable:$true] %s221_s7  ;;  %s254_s6 = int_to_ptr.hbm [resolvable:$true] %s253_s6 }
  0x17   : > { %985 = dma.hbm_to_vmem [thread:$0]  (!%p1382_p10), %s222_s7, 4096, %s224_s10, [#allocation7], %s1279_s15, %s1279_s15, %s1280_s16  }
  0x18   : > { %s238_s14 = sshll.u32 %s1586_s2, 4  ;;  %s1282_s9 = smov [#allocation9]   ;;  %s239_s14 = int_to_ptr.hbm [resolvable:$true] %s238_s14 }
  0x19   : > { %988 = dma.hbm_to_vmem [thread:$0]  (!%p1382_p10), %s239_s14, 32, %s241_s24, [#allocation7]  }
  0x1a   : > { %s255_s12 = sshll.u32 %s1282_s9, 4  ;;  %s1575_s13 = smov 128   ;;  %s256_s12 = int_to_ptr.vmem [resolvable:$true] %s255_s12 }
  0x1b   : > { %s1576_s7 = smov 8   ;;  %s49_s10 = sadd.s32 1, %s1264_s20 }
  0x1c   : > { %991 = dma.hbm_to_vmem [thread:$0]  (!%p1382_p10), %s254_s6, 4096, %s256_s12, [#allocation10], %s1575_s13, %s1575_s13, %s1576_s7  }
  0x1d   : > { %s42_s15 = sadd.s32 1, %s1272_s22  ;;  %p56_p12 = scmp.ne.s32.totalorder %s1264_s20, %s1260_s19 }
  0x1e   : > { %p44_p13 = scmp.ge.s32.totalorder %s42_s15, 2  ;;  %p57_p0 = scmp.eq.s32.totalorder %s1276_s23, 0 }
  0x1f   : > { %p1409_p3 = por %p1355_p2, %p56_p12  ;;  %p1003_p5 = scmp.lt.s32.totalorder %s1276_s23, 2 }
  0x20   : > { %s1596_s15 = smov (%p44_p13, %s42_s15), 0  ;;  %p58_p7 = por %p57_p0, %p56_p12 }
  0x21   : > { %s275_s11 = sand.u32 1, %s1264_s20   ;;  %s46_s16 = ssub.s32 %s1272_s22, %s1596_s15 }
  0x22   : > { %p47_p9 = scmp.eq.s32.totalorder %s46_s16, 0  ;;  %s964_s17 = smul.u32 104, %s275_s11 }
  0x23   : > { %s962_s24 = smul.u32 104, %s1272_s22  ;;  %p993_p10 = pnand %p1003_p5, %p58_p7 }
  0x24   : > { %s1421_s25 = scalar_select %p47_p9, %s1264_s20, %s49_s10  }
  0x25   : > { %s284_s27 = scalar_lea.hbm %s1569_s0, %s962_s24  ;;  %s279_s12 = scalar_lea.vmem [#allocation3], %s964_s17 }
  0x26   : > { %s285_s9 = sshll.u32 %s284_s27, 4  ;;  %s287_s13 = sshll.u32 %s279_s12, 4  ;;  %s286_s9 = int_to_ptr.hbm [resolvable:$true] %s285_s9  ;;  %s288_s13 = int_to_ptr.vmem [resolvable:$true] %s287_s13 }
  0x27   : > { %s276_s7 = scalar_lea.sflag [#allocation4], %s275_s11  ;;  %s1588_s1 = smov 8  }
  0x28   : > { %s1589_s2 = smov 128   ;;  %299 = sbr.rel (%p1374_p8) target bundleno = 449 (0x1c1), region = 40 }
  0x29   : > { %995 = dma.hbm_to_vmem [thread:$0]  (!%p993_p10), %s286_s9, 1664, %s288_s13, %s276_s7, %s1589_s2, %s1589_s2, %s1588_s1  }
  0x2a   : > { %s1432_s10 = sand.u32 (!%p1374_p8), 1, %s1260_s19  }
  0x2b   : > { %s965_s16 = smul.u32 (!%p1374_p8), 104, %s1432_s10  ;;  %s302_s17 = scalar_lea.sflag (!%p1374_p8), [#allocation4], %s1432_s10 }
  0x2d   : > { %s1438_s24 = scalar_lea.vmem [#allocation3], %s965_s16 }
  0x2e   : > { %1239 = dma.done.wait (%p1361_p4), %s302_s17, 1664  }
  0x2f   : > { %1241 = vsyncadd (%p1361_p4), %s302_s17, 4294965632 }
  0x30   : > { %1243 = dma.done.wait (%p1351_p1), [#allocation7], 4128  }
  0x31   : > { %1245 = vsyncadd (%p1351_p1), [#allocation7], 4294963168 }
  0x32   : > { %1247 = dma.done.wait (%p1351_p1), [#allocation10], 4096  }
  0x33   : > { %1249 = vsyncadd (%p1351_p1), [#allocation10], 4294963200  ;;  %v419_v0 = vld [vmem:[#allocation6 + $0xf0] sm:$0xff]  ;;  %v420_v1 = vld [vmem:[#allocation6 + $0xf8] sm:$0xff]  ;;  %s1503_s26 = scalar_lea.vmem [#allocation11], %s965_s16  ;;  %s963_s28 = smul.u32 104, %s1268_s21 }
  0x34   : > { %v417_v2 = vld [vmem:[#allocation6 + $0xe0] sm:$0xff]  ;;  %427 = vmatpush.msra.mxu0 %v419_v0  ;;  %483 = vmatpush.msra.mxu1 %v420_v1  ;;  %v418_v3 = vld [vmem:[#allocation6 + $0xe8] sm:$0xff]  ;;  %v415_v4 = vld [vmem:[#allocation6 + $0xd0] sm:$0xff]  ;;  %s808_s11 = sshll.u32 %s1503_s26, 4  ;;  %s795_s21 = scalar_lea.sflag [#allocation5], %s1432_s10  ;;  %s809_s11 = int_to_ptr.vmem [resolvable:$true] %s808_s11 }
  0x35   : > { %v416_v5 = vld [vmem:[#allocation6 + $0xd8] sm:$0xff]  ;;  %v413_v6 = vld [vmem:[#allocation6 + $0xc0] sm:$0xff]  ;;  %v414_v7 = vld [vmem:[#allocation6 + $0xc8] sm:$0xff]  ;;  %s807_s7 = scalar_lea.hbm %s1574_s5, %s963_s28  ;;  %s1206_s16 = scalar_lea.hbm %s1574_s5, 208 }
  0x36   : > { %428 = vmatpush.msra.mxu0 %v417_v2  ;;  %484 = vmatpush.msra.mxu1 %v418_v3  ;;  %v411_v8 = vld [vmem:[#allocation6 + $0xb0] sm:$0xff]  ;;  %v412_v9 = vld [vmem:[#allocation6 + $0xb8] sm:$0xff]  ;;  %v409_v10 = vld [vmem:[#allocation6 + $0xa0] sm:$0xff]  ;;  %s810_s30 = sshll.u32 %s807_s7, 4  ;;  %s811_s30 = int_to_ptr.hbm [resolvable:$true] %s810_s30 }
  0x37   : > { %v410_v11 = vld [vmem:[#allocation6 + $0xa8] sm:$0xff]  ;;  %v407_v12 = vld [vmem:[#allocation6 + $0x90] sm:$0xff]  ;;  %v408_v13 = vld [vmem:[#allocation6 + $0x98] sm:$0xff]  ;;  %s1200_s6 = sshra.s32 %s811_s30, 4  ;;  %s1201_s6 = int_to_ptr.hbm [resolvable:$true] %s1200_s6 }
  0x38   : > { %429 = vmatpush.msra.mxu0 %v415_v4  ;;  %485 = vmatpush.msra.mxu1 %v416_v5  ;;  %v405_v14 = vld [vmem:[#allocation6 + $0x80] sm:$0xff]  ;;  %v406_v15 = vld [vmem:[#allocation6 + $0x88] sm:$0xff]  ;;  %v403_v16 = vld [vmem:[#allocation6 + $0x70] sm:$0xff]  ;;  %s1202_s27 = scalar_lea.hbm %s1201_s6, 104  ;;  %p1207_p8 = scmp.lt.s32.totalorder %s1201_s6, %s1574_s5 }
  0x39   : > { %v404_v17 = vld [vmem:[#allocation6 + $0x78] sm:$0xff]  ;;  %v401_v18 = vld [vmem:[#allocation6 + $0x60] sm:$0xff]  ;;  %v402_v19 = vld [vmem:[#allocation6 + $0x68] sm:$0xff]  ;;  %p1203_p1 = scmp.ne.s32.totalorder %s1201_s6, %s1202_s27  ;;  %p1208_p12 = scmp.lt.s32.totalorder %s1206_s16, %s1202_s27 }
  0x3a   : > { %430 = vmatpush.msra.mxu0 %v413_v6  ;;  %486 = vmatpush.msra.mxu1 %v414_v7  ;;  %v399_v20 = vld [vmem:[#allocation6 + $0x50] sm:$0xff]  ;;  %v400_v21 = vld [vmem:[#allocation6 + $0x58] sm:$0xff]  ;;  %v397_v22 = vld [vmem:[#allocation6 + $0x40] sm:$0xff] }
  0x3b   : > { %v398_v23 = vld [vmem:[#allocation6 + $0x48] sm:$0xff]  ;;  %v395_v24 = vld [vmem:[#allocation6 + $0x30] sm:$0xff]  ;;  %v396_v25 = vld [vmem:[#allocation6 + $0x38] sm:$0xff]  ;;  %p1204_p2 = pnand %p1203_p1, %p1409_p3  ;;  %p1209_p13 = por %p1208_p12, %p1207_p8 }
  0x3c   : > { %431 = vmatpush.msra.mxu0 %v411_v8  ;;  %487 = vmatpush.msra.mxu1 %v412_v9  ;;  %v393_v26 = vld [vmem:[#allocation6 + $0x20] sm:$0xff]  ;;  %v394_v27 = vld [vmem:[#allocation6 + $0x28] sm:$0xff]  ;;  %v391_v28 = vld [vmem:[#allocation6 + $0x10] sm:$0xff] }
  0x3d   : > { %v392_v29 = vld [vmem:[#allocation6 + $0x18] sm:$0xff]  ;;  %v389_v30 = vld [vmem:[#allocation6] sm:$0xff]  ;;  %v390_v31 = vld [vmem:[#allocation6 + $0x8] sm:$0xff]  ;;  %p1205_p4 = pneg %p1204_p2 }
  0x3e   : > { %432 = vmatpush.msra.mxu0 %v409_v10  ;;  %488 = vmatpush.msra.mxu1 %v410_v11  ;;  %v376_v32 = vld [vmem:[%s1438_s24] sm:$0xff]  ;;  %v377_v33 = vld [vmem:[%s1438_s24 + $0x8] sm:$0xff]  ;;  %v378_v34 = vld [vmem:[%s1438_s24 + $0x10] sm:$0xff] }
  0x3f   : > { %v379_v35 = vld [vmem:[%s1438_s24 + $0x18] sm:$0xff]  ;;  %v380_v36 = vld [vmem:[%s1438_s24 + $0x20] sm:$0xff]  ;;  %v381_v37 = vld [vmem:[%s1438_s24 + $0x28] sm:$0xff]  ;;  %p1210_p0 = pnand %p1209_p13, %p1205_p4 }
  0x40   : > { %433 = vmatpush.msra.mxu0 %v407_v12  ;;  %489 = vmatpush.msra.mxu1 %v408_v13  ;;  %v382_v38 = vld [vmem:[%s1438_s24 + $0x30] sm:$0xff]  ;;  %v383_v39 = vld [vmem:[%s1438_s24 + $0x38] sm:$0xff]  ;;  %v384_v40 = vld [vmem:[%s1438_s24 + $0x40] sm:$0xff] }
  0x41   : > { %v593_v41 = vld [vmem:[#allocation9 + $0x78] sm:$0xff]  ;;  %v592_v43 = vld [vmem:[#allocation9 + $0x70] sm:$0xff]  ;;  %v591_v45 = vld [vmem:[#allocation9 + $0x68] sm:$0xff] }
  0x42   : > { %434 = vmatpush.msra.mxu0 %v405_v14  ;;  %490 = vmatpush.msra.mxu1 %v406_v15  ;;  %v609_v42 = vld [vmem:[#allocation9 + $0xf8] sm:$0xff]  ;;  %v608_v44 = vld [vmem:[#allocation9 + $0xf0] sm:$0xff]  ;;  %v607_v46 = vld [vmem:[#allocation9 + $0xe8] sm:$0xff] }
  0x43   : > { %610 = vmatpush.msra.mxu2 %v593_v41  ;;  %666 = vmatpush.msra.mxu3 %v609_v42  ;;  %v590_v47 = vld [vmem:[#allocation9 + $0x60] sm:$0xff]  ;;  %v589_v50 = vld [vmem:[#allocation9 + $0x58] sm:$0xff]  ;;  %v588_v52 = vld [vmem:[#allocation9 + $0x50] sm:$0xff] }
  0x44   : > { %435 = vmatpush.msra.mxu0 %v403_v16  ;;  %491 = vmatpush.msra.mxu1 %v404_v17  ;;  %v606_v48 = vld [vmem:[#allocation9 + $0xe0] sm:$0xff]  ;;  %v605_v51 = vld [vmem:[#allocation9 + $0xd8] sm:$0xff]  ;;  %v604_v53 = vld [vmem:[#allocation9 + $0xd0] sm:$0xff] }
  0x45   : > { %611 = vmatpush.msra.mxu2 %v592_v43  ;;  %667 = vmatpush.msra.mxu3 %v608_v44  ;;  %v385_v49 = vld [vmem:[%s1438_s24 + $0x48] sm:$0xff]  ;;  %v587_v54 = vld [vmem:[#allocation9 + $0x48] sm:$0xff] }
  0x46   : > { %436 = vmatpush.msra.mxu0 %v401_v18  ;;  %492 = vmatpush.msra.mxu1 %v402_v19  ;;  %v603_v55 = vld [vmem:[#allocation9 + $0xc8] sm:$0xff]  ;;  %v586_v56 = vld [vmem:[#allocation9 + $0x40] sm:$0xff]  ;;  %v585_v59 = vld [vmem:[#allocation9 + $0x38] sm:$0xff] }
  0x47   : > { %612 = vmatpush.msra.mxu2 %v591_v45  ;;  %668 = vmatpush.msra.mxu3 %v607_v46  ;;  %v602_v57 = vld [vmem:[#allocation9 + $0xc0] sm:$0xff]  ;;  %v601_v60 = vld [vmem:[#allocation9 + $0xb8] sm:$0xff]  ;;  %v584_v61 = vld [vmem:[#allocation9 + $0x30] sm:$0xff] }
  0x48   : > { %437 = vmatpush.msra.mxu0 %v399_v20  ;;  %493 = vmatpush.msra.mxu1 %v400_v21  ;;  %v386_v58 = vld [vmem:[%s1438_s24 + $0x50] sm:$0xff]  ;;  %v600_v62 = vld [vmem:[#allocation9 + $0xb0] sm:$0xff] }
  0x49   : > { %613 = vmatpush.msra.mxu2 %v590_v47  ;;  %669 = vmatpush.msra.mxu3 %v606_v48  ;;  %v583_v63 = vld [vmem:[#allocation9 + $0x28] sm:$0xff]  ;;  %v582_v1 = vld [vmem:[#allocation9 + $0x20] sm:$0xff]  ;;  %v581_v4 = vld [vmem:[#allocation9 + $0x18] sm:$0xff] }
  0x4a   : > { %438 = vmatpush.msra.mxu0 %v397_v22  ;;  %494 = vmatpush.msra.mxu1 %v398_v23  ;;  %v599_v0 = vld [vmem:[#allocation9 + $0xa8] sm:$0xff]  ;;  %v598_v2 = vld [vmem:[#allocation9 + $0xa0] sm:$0xff]  ;;  %v597_v5 = vld [vmem:[#allocation9 + $0x98] sm:$0xff] }
  0x4b   : > { %614 = vmatpush.msra.mxu2 %v589_v50  ;;  %670 = vmatpush.msra.mxu3 %v605_v51  ;;  %v387_v3 = vld [vmem:[%s1438_s24 + $0x58] sm:$0xff]  ;;  %v388_v8 = vld [vmem:[%s1438_s24 + $0x60] sm:$0xff]  ;;  %v421_v13 = vld [vmem:[#allocation8] sm:$0x3] }
  0x4c   : > { %439 = vmatpush.msra.mxu0 %v395_v24  ;;  %495 = vmatpush.msra.mxu1 %v396_v25  ;;  %v580_v6 = vld [vmem:[#allocation9 + $0x10] sm:$0xff]  ;;  %v579_v9 = vld [vmem:[#allocation9 + $0x8] sm:$0xff]  ;;  %v578_v11 = vld [vmem:[#allocation9] sm:$0xff]  ;;  %v1465_v14 = vperm.slane %v421_v13, 0  ;;  %v1467_v15 = vperm.slane %v421_v13, 1 }
  0x4d   : > { %615 = vmatpush.msra.mxu2 %v588_v52  ;;  %671 = vmatpush.msra.mxu3 %v604_v53  ;;  %v596_v7 = vld [vmem:[#allocation9 + $0x90] sm:$0xff]  ;;  %v595_v10 = vld [vmem:[#allocation9 + $0x88] sm:$0xff]  ;;  %v594_v12 = vld [vmem:[#allocation9 + $0x80] sm:$0xff] }
  0x4e   : > { %440 = vmatpush.msra.mxu0 %v393_v26  ;;  %496 = vmatpush.msra.mxu1 %v394_v27 }
  0x4f   : > { %616 = vmatpush.msra.mxu2 %v587_v54  ;;  %672 = vmatpush.msra.mxu3 %v603_v55 }
  0x50   : > { %441 = vmatpush.msra.mxu0 %v391_v28  ;;  %497 = vmatpush.msra.mxu1 %v392_v29 }
  0x51   : > { %617 = vmatpush.msra.mxu2 %v586_v56  ;;  %673 = vmatpush.msra.mxu3 %v602_v57 }
  0x52   : > { %442 = vmatpush.msra.mxu0 %v389_v30  ;;  %498 = vmatpush.msra.mxu1 %v390_v31 }
  0x53   : > { %443 = vmatmul.f32.vlgmr.msra.gmra.mxu0 %v376_v32  ;;  %499 = vmatmul.f32.vlgmr.msra.gmra.mxu1 %v376_v32 }
  0x54   : > { %618 = vmatpush.msra.mxu2 %v585_v59  ;;  %674 = vmatpush.msra.mxu3 %v601_v60 }
  0x56   : > { %619 = vmatpush.msra.mxu2 %v584_v61  ;;  %675 = vmatpush.msra.mxu3 %v600_v62 }
  0x58   : > { %620 = vmatpush.msra.mxu2 %v583_v63  ;;  %676 = vmatpush.msra.mxu3 %v599_v0 }
  0x5a   : > { %621 = vmatpush.msra.mxu2 %v582_v1  ;;  %677 = vmatpush.msra.mxu3 %v598_v2 }
  0x5b   : > { %446 = vmatmul.f32.gmra.mxu0 %v377_v33  ;;  %502 = vmatmul.f32.gmra.mxu1 %v377_v33 }
  0x5c   : > { %622 = vmatpush.msra.mxu2 %v581_v4  ;;  %678 = vmatpush.msra.mxu3 %v597_v5 }
  0x5e   : > { %623 = vmatpush.msra.mxu2 %v580_v6  ;;  %679 = vmatpush.msra.mxu3 %v596_v7 }
  0x60   : > { %624 = vmatpush.msra.mxu2 %v579_v9  ;;  %680 = vmatpush.msra.mxu3 %v595_v10 }
  0x62   : > { %625 = vmatpush.msra.mxu2 %v578_v11  ;;  %681 = vmatpush.msra.mxu3 %v594_v12 }
  0x63   : > { %449 = vmatmul.f32.gmra.mxu0 %v378_v34  ;;  %505 = vmatmul.f32.gmra.mxu1 %v378_v34 }
  0x6b   : > { %452 = vmatmul.f32.gmra.mxu0 %v379_v35  ;;  %508 = vmatmul.f32.gmra.mxu1 %v379_v35 }
  0x73   : > { %455 = vmatmul.f32.gmra.mxu0 %v380_v36  ;;  %511 = vmatmul.f32.gmra.mxu1 %v380_v36 }
  0x7b   : > { %458 = vmatmul.f32.gmra.mxu0 %v381_v37  ;;  %514 = vmatmul.f32.gmra.mxu1 %v381_v37 }
  0x83   : > { %461 = vmatmul.f32.gmra.mxu0 %v382_v38  ;;  %517 = vmatmul.f32.gmra.mxu1 %v382_v38 }
  0x8b   : > { %464 = vmatmul.f32.gmra.mxu0 %v383_v39  ;;  %520 = vmatmul.f32.gmra.mxu1 %v383_v39 }
  0x93   : > { %467 = vmatmul.f32.gmra.mxu0 %v384_v40  ;;  %523 = vmatmul.f32.gmra.mxu1 %v384_v40 }
  0x9b   : > { %470 = vmatmul.f32.gmra.mxu0 %v385_v49  ;;  %526 = vmatmul.f32.gmra.mxu1 %v385_v49 }
  0xa3   : > { %473 = vmatmul.f32.gmra.mxu0 %v386_v58  ;;  %529 = vmatmul.f32.gmra.mxu1 %v386_v58 }
  0xab   : > { %476 = vmatmul.f32.gmra.mxu0 %v387_v3  ;;  %532 = vmatmul.f32.gmra.mxu1 %v387_v3 }
  0xb3   : > { %479 = vmatmul.f32.gmra.mxu0 %v388_v8  ;;  %535 = vmatmul.f32.gmra.mxu1 %v388_v8 }
  0xd0   : > { %v444_v16 = vpop.f32.mrf.mxu0  ;;  %v500_v17 = vpop.f32.mrf.mxu1 }
  0xd1   : > { %v445_v18 = vadd.f32 %v444_v16, %v1465_v14  ;;  %v501_v19 = vadd.f32 %v500_v17, %v1467_v15 }
  0xd3   : > { %v539_v20 = vmax.f32 %v445_v18, 0.0  ;;  %v540_v21 = vmax.f32 %v501_v19, 0.0 }
  0xd5   : > { %626 = vmatmul.f32.vlgmr.msra.gmra.mxu2 %v539_v20  ;;  %682 = vmatmul.f32.vlgmr.msra.gmra.mxu3 %v540_v21 }
  0xd8   : > { %v447_v22 = vpop.f32.mrf.mxu0  ;;  %v503_v23 = vpop.f32.mrf.mxu1 }
  0xd9   : > { %v448_v24 = vadd.f32 %v447_v22, %v1465_v14  ;;  %v504_v25 = vadd.f32 %v503_v23, %v1467_v15 }
  0xdb   : > { %v541_v26 = vmax.f32 %v448_v24, 0.0  ;;  %v542_v27 = vmax.f32 %v504_v25, 0.0 }
  0xdd   : > { %629 = vmatmul.f32.gmra.mxu2 %v541_v26  ;;  %685 = vmatmul.f32.gmra.mxu3 %v542_v27 }
  0xe0   : > { %v450_v28 = vpop.f32.mrf.mxu0  ;;  %v506_v29 = vpop.f32.mrf.mxu1 }
  0xe1   : > { %v451_v30 = vadd.f32 %v450_v28, %v1465_v14  ;;  %v507_v31 = vadd.f32 %v506_v29, %v1467_v15 }
  0xe3   : > { %v543_v32 = vmax.f32 %v451_v30, 0.0  ;;  %v544_v33 = vmax.f32 %v507_v31, 0.0 }
  0xe5   : > { %632 = vmatmul.f32.gmra.mxu2 %v543_v32  ;;  %688 = vmatmul.f32.gmra.mxu3 %v544_v33  ;;  %v1498_v32 = vld [vmem:[%s1573_s4] ss:$0 sm:$0xff] }
  0xe8   : > { %v453_v34 = vpop.f32.mrf.mxu0  ;;  %v509_v35 = vpop.f32.mrf.mxu1 }
  0xe9   : > { %v454_v36 = vadd.f32 %v453_v34, %v1465_v14  ;;  %v510_v37 = vadd.f32 %v509_v35, %v1467_v15 }
  0xeb   : > { %v545_v38 = vmax.f32 %v454_v36, 0.0  ;;  %v546_v39 = vmax.f32 %v510_v37, 0.0 }
  0xed   : > { %635 = vmatmul.f32.gmra.mxu2 %v545_v38  ;;  %691 = vmatmul.f32.gmra.mxu3 %v546_v39 }
  0xf0   : > { %v456_v40 = vpop.f32.mrf.mxu0  ;;  %v512_v41 = vpop.f32.mrf.mxu1 }
  0xf1   : > { %v457_v42 = vadd.f32 %v456_v40, %v1465_v14  ;;  %v513_v43 = vadd.f32 %v512_v41, %v1467_v15 }
  0xf3   : > { %v547_v44 = vmax.f32 %v457_v42, 0.0  ;;  %v548_v45 = vmax.f32 %v513_v43, 0.0 }
  0xf5   : > { %638 = vmatmul.f32.gmra.mxu2 %v547_v44  ;;  %694 = vmatmul.f32.gmra.mxu3 %v548_v45 }
  0xf8   : > { %v459_v46 = vpop.f32.mrf.mxu0  ;;  %v515_v47 = vpop.f32.mrf.mxu1 }
  0xf9   : > { %v460_v48 = vadd.f32 %v459_v46, %v1465_v14  ;;  %v516_v49 = vadd.f32 %v515_v47, %v1467_v15 }
  0xfb   : > { %v549_v50 = vmax.f32 %v460_v48, 0.0  ;;  %v550_v51 = vmax.f32 %v516_v49, 0.0 }
  0xfd   : > { %641 = vmatmul.f32.gmra.mxu2 %v549_v50  ;;  %697 = vmatmul.f32.gmra.mxu3 %v550_v51 }
 0x100   : > { %v462_v52 = vpop.f32.mrf.mxu0  ;;  %v518_v53 = vpop.f32.mrf.mxu1 }
 0x101   : > { %v463_v54 = vadd.f32 %v462_v52, %v1465_v14  ;;  %v519_v55 = vadd.f32 %v518_v53, %v1467_v15 }
 0x103   : > { %v551_v56 = vmax.f32 %v463_v54, 0.0  ;;  %v552_v57 = vmax.f32 %v519_v55, 0.0 }
 0x105   : > { %644 = vmatmul.f32.gmra.mxu2 %v551_v56  ;;  %700 = vmatmul.f32.gmra.mxu3 %v552_v57 }
 0x108   : > { %v465_v58 = vpop.f32.mrf.mxu0  ;;  %v521_v59 = vpop.f32.mrf.mxu1 }
 0x109   : > { %v466_v60 = vadd.f32 %v465_v58, %v1465_v14  ;;  %v522_v61 = vadd.f32 %v521_v59, %v1467_v15 }
 0x10b   : > { %v553_v62 = vmax.f32 %v466_v60, 0.0  ;;  %v554_v63 = vmax.f32 %v522_v61, 0.0 }
 0x10d   : > { %647 = vmatmul.f32.gmra.mxu2 %v553_v62  ;;  %703 = vmatmul.f32.gmra.mxu3 %v554_v63 }
 0x110   : > { %v468_v0 = vpop.f32.mrf.mxu0  ;;  %v524_v1 = vpop.f32.mrf.mxu1 }
 0x111   : > { %v469_v2 = vadd.f32 %v468_v0, %v1465_v14  ;;  %v525_v3 = vadd.f32 %v524_v1, %v1467_v15 }
 0x113   : > { %v555_v4 = vmax.f32 %v469_v2, 0.0  ;;  %v556_v5 = vmax.f32 %v525_v3, 0.0 }
 0x115   : > { %650 = vmatmul.f32.gmra.mxu2 %v555_v4  ;;  %706 = vmatmul.f32.gmra.mxu3 %v556_v5 }
 0x118   : > { %v471_v6 = vpop.f32.mrf.mxu0  ;;  %v527_v7 = vpop.f32.mrf.mxu1 }
 0x119   : > { %v472_v8 = vadd.f32 %v471_v6, %v1465_v14  ;;  %v528_v9 = vadd.f32 %v527_v7, %v1467_v15 }
 0x11b   : > { %v557_v10 = vmax.f32 %v472_v8, 0.0  ;;  %v558_v11 = vmax.f32 %v528_v9, 0.0 }
 0x11d   : > { %653 = vmatmul.f32.gmra.mxu2 %v557_v10  ;;  %709 = vmatmul.f32.gmra.mxu3 %v558_v11 }
 0x120   : > { %v474_v12 = vpop.f32.mrf.mxu0  ;;  %v530_v13 = vpop.f32.mrf.mxu1 }
 0x121   : > { %v475_v16 = vadd.f32 %v474_v12, %v1465_v14  ;;  %v531_v17 = vadd.f32 %v530_v13, %v1467_v15 }
 0x123   : > { %v559_v18 = vmax.f32 %v475_v16, 0.0  ;;  %v560_v19 = vmax.f32 %v531_v17, 0.0 }
 0x125   : > { %656 = vmatmul.f32.gmra.mxu2 %v559_v18  ;;  %712 = vmatmul.f32.gmra.mxu3 %v560_v19 }
 0x128   : > { %v477_v20 = vpop.f32.mrf.mxu0  ;;  %v533_v21 = vpop.f32.mrf.mxu1 }
 0x129   : > { %v478_v22 = vadd.f32 %v477_v20, %v1465_v14  ;;  %v534_v23 = vadd.f32 %v533_v21, %v1467_v15 }
 0x12b   : > { %v561_v24 = vmax.f32 %v478_v22, 0.0  ;;  %v562_v25 = vmax.f32 %v534_v23, 0.0 }
 0x12d   : > { %659 = vmatmul.f32.gmra.mxu2 %v561_v24  ;;  %715 = vmatmul.f32.gmra.mxu3 %v562_v25 }
 0x130   : > { %v480_v26 = vpop.f32.mrf.mxu0  ;;  %v536_v27 = vpop.f32.mrf.mxu1 }
 0x131   : > { %v481_v28 = vadd.f32 %v480_v26, %v1465_v14  ;;  %v537_v29 = vadd.f32 %v536_v27, %v1467_v15 }
 0x133   : > { %v563_v30 = vmax.f32 %v481_v28, 0.0  ;;  %v564_v31 = vmax.f32 %v537_v29, 0.0 }
 0x135   : > { %662 = vmatmul.f32.gmra.mxu2 %v563_v30  ;;  %718 = vmatmul.f32.gmra.mxu3 %v564_v31 }
 0x158   : > { %v627_v33 = vpop.f32.mrf.mxu2  ;;  %v683_v34 = vpop.f32.mrf.mxu3 }
 0x159   : > { %v684_v35 = vadd.f32 %v683_v34, %v627_v33 }
 0x15b   : > { %v768_v36 = vadd.f32 %v1498_v32, %v684_v35 }
 0x15d   : > { %781 = vst [vmem:[%s1503_s26] sm:$0xff] %v768_v36 }
 0x160   : > { %v630_v14 = vpop.f32.mrf.mxu2  ;;  %v686_v15 = vpop.f32.mrf.mxu3 }
 0x161   : > { %v687_v37 = vadd.f32 %v686_v15, %v630_v14 }
 0x163   : > { %v769_v38 = vadd.f32 %v1498_v32, %v687_v37 }
 0x165   : > { %782 = vst [vmem:[%s1503_s26 + $0x8] sm:$0xff] %v769_v38 }
 0x168   : > { %v633_v39 = vpop.f32.mrf.mxu2  ;;  %v689_v40 = vpop.f32.mrf.mxu3 }
 0x169   : > { %v690_v41 = vadd.f32 %v689_v40, %v633_v39 }
 0x16b   : > { %v770_v42 = vadd.f32 %v1498_v32, %v690_v41 }
 0x16d   : > { %783 = vst [vmem:[%s1503_s26 + $0x10] sm:$0xff] %v770_v42 }
 0x170   : > { %v636_v43 = vpop.f32.mrf.mxu2  ;;  %v692_v44 = vpop.f32.mrf.mxu3 }
 0x171   : > { %v693_v45 = vadd.f32 %v692_v44, %v636_v43 }
 0x173   : > { %v771_v46 = vadd.f32 %v1498_v32, %v693_v45 }
 0x175   : > { %784 = vst [vmem:[%s1503_s26 + $0x18] sm:$0xff] %v771_v46 }
 0x178   : > { %v639_v47 = vpop.f32.mrf.mxu2  ;;  %v695_v48 = vpop.f32.mrf.mxu3 }
 0x179   : > { %v696_v49 = vadd.f32 %v695_v48, %v639_v47 }
 0x17b   : > { %v772_v50 = vadd.f32 %v1498_v32, %v696_v49 }
 0x17d   : > { %785 = vst [vmem:[%s1503_s26 + $0x20] sm:$0xff] %v772_v50 }
 0x180   : > { %v642_v51 = vpop.f32.mrf.mxu2  ;;  %v698_v52 = vpop.f32.mrf.mxu3 }
 0x181   : > { %v699_v53 = vadd.f32 %v698_v52, %v642_v51 }
 0x183   : > { %v773_v54 = vadd.f32 %v1498_v32, %v699_v53 }
 0x185   : > { %786 = vst [vmem:[%s1503_s26 + $0x28] sm:$0xff] %v773_v54 }
 0x188   : > { %v645_v55 = vpop.f32.mrf.mxu2  ;;  %v701_v56 = vpop.f32.mrf.mxu3 }
 0x189   : > { %v702_v57 = vadd.f32 %v701_v56, %v645_v55 }
 0x18b   : > { %v774_v58 = vadd.f32 %v1498_v32, %v702_v57 }
 0x18d   : > { %787 = vst [vmem:[%s1503_s26 + $0x30] sm:$0xff] %v774_v58 }
 0x190   : > { %v648_v59 = vpop.f32.mrf.mxu2  ;;  %v704_v60 = vpop.f32.mrf.mxu3 }
 0x191   : > { %v705_v61 = vadd.f32 %v704_v60, %v648_v59 }
 0x193   : > { %v775_v62 = vadd.f32 %v1498_v32, %v705_v61 }
 0x195   : > { %788 = vst [vmem:[%s1503_s26 + $0x38] sm:$0xff] %v775_v62 }
 0x198   : > { %v651_v63 = vpop.f32.mrf.mxu2  ;;  %v707_v0 = vpop.f32.mrf.mxu3 }
 0x199   : > { %v708_v1 = vadd.f32 %v707_v0, %v651_v63 }
 0x19b   : > { %v776_v2 = vadd.f32 %v1498_v32, %v708_v1 }
 0x19d   : > { %789 = vst [vmem:[%s1503_s26 + $0x40] sm:$0xff] %v776_v2 }
 0x1a0   : > { %v654_v3 = vpop.f32.mrf.mxu2  ;;  %v710_v4 = vpop.f32.mrf.mxu3 }
 0x1a1   : > { %v711_v5 = vadd.f32 %v710_v4, %v654_v3 }
 0x1a3   : > { %v777_v6 = vadd.f32 %v1498_v32, %v711_v5 }
 0x1a5   : > { %790 = vst [vmem:[%s1503_s26 + $0x48] sm:$0xff] %v777_v6 }
 0x1a8   : > { %v657_v7 = vpop.f32.mrf.mxu2  ;;  %v713_v8 = vpop.f32.mrf.mxu3 }
 0x1a9   : > { %v714_v9 = vadd.f32 %v713_v8, %v657_v7 }
 0x1ab   : > { %v778_v10 = vadd.f32 %v1498_v32, %v714_v9 }
 0x1ad   : > { %791 = vst [vmem:[%s1503_s26 + $0x50] sm:$0xff] %v778_v10 }
 0x1b0   : > { %v660_v11 = vpop.f32.mrf.mxu2  ;;  %v716_v12 = vpop.f32.mrf.mxu3 }
 0x1b1   : > { %v717_v13 = vadd.f32 %v716_v12, %v660_v11 }
 0x1b3   : > { %v779_v16 = vadd.f32 %v1498_v32, %v717_v13 }
 0x1b5   : > { %792 = vst [vmem:[%s1503_s26 + $0x58] sm:$0xff] %v779_v16 }
 0x1b8   : > { %v663_v17 = vpop.f32.mrf.mxu2  ;;  %v719_v18 = vpop.f32.mrf.mxu3 }
 0x1b9   : > { %v720_v19 = vadd.f32 %v719_v18, %v663_v17 }
 0x1bb   : > { %v780_v20 = vadd.f32 %v1498_v32, %v720_v19 }
 0x1bd   : > { %793 = vst [vmem:[%s1503_s26 + $0x60] sm:$0xff] %v780_v20 }
 0x1be   : > { %1213 = shalt.err (!%p1210_p0)
}
 0x1bf   : > { %s1285_s10 = smov 128   ;;  %s1286_s1 = smov 8  }
 0x1c0   : > { %980 = dma.vmem_to_hbm [thread:$0]  (%p1409_p3), %s809_s11, 1664, %s811_s30, %s795_s21, %s1285_s10, %s1285_s10, %s1286_s1  }
 0x1c1 PF: > { %s825_s2 = sand.u32 1, %s1256_s18   ;;  %p997_p5 = pnand %p953_p11, %p1366_p6 }
 0x1c2   : > { %s826_s26 = scalar_lea.sflag [#allocation5], %s825_s2 }
 0x1c3   : > { %p998_p7 = pneg %p997_p5 }
 0x1c5   : > { %1251 = dma.done.wait (%p998_p7), %s826_s26, 1664  }
 0x1c6   : > { %1253 = vsyncadd (%p998_p7), %s826_s26, 4294965632  ;;  %s23_s23 = sadd.s32 1, %s1276_s23   ;;  %s1590_s18 = smov %s1260_s19 }
 0x1c7   : > { %p20_p9 = scmp.ge.s32.totalorder %s23_s23, 4   ;;  %s1591_s19 = smov %s1264_s20 }
 0x1c8   : > { %s1592_s20 = smov %s1421_s25  ;;  %s1593_s21 = smov %s1272_s22 }
 0x1c9   : > { %s1594_s22 = smov %s1596_s15  ;;  %22 = sbr.rel (!%p20_p9) target bundleno = 11 (0xb), region = 111 }
 0x1ce   :  { %832 = vsyncpa [#allocation4], 1 }
 0x1cf   :  { %834 = vsyncpa [#allocation4 + $0x1], 1 }
 0x1d0   :  { %835 = vsyncpa [#allocation7], 1 }
 0x1d1   :  { %836 = vsyncpa [#allocation10], 1 }
 0x1d2   :  { %837 = vsyncpa [#allocation5], 1 }
 0x1d3   :  { %839 = vsyncpa [#allocation5 + $0x1], 1 }

</bundles_post_ra>
